<compile_context>
chip_gen: v6e
topology: v6e:2x2x1
jax: 0.10.0
libtpu: 0.0.40
codegen_flags: <defaults>
</compile_context>

<pallas_src>
import math
import numpy as np
import jax
import jax.numpy as jnp
from jax.experimental import pallas as pl
from jax.experimental.pallas import tpu as pltpu

BLOCK = 128        # sparsity block size (lane-aligned)
TM_DEFAULT = 512   # sequence rows per grid step (sublane multiple; sweep 128-512)


def _round_up(x, m):
    return int(math.ceil(x / m)) * m


def _bsl_kernel(row_ref, col_ref, ptr_ref, first_ref, last_ref, valid_ref,
                x_ref, w_ref, b_ref, o_ref, acc_ref):
    """Grid = (seq_tiles, n_schedule_entries).

    The second grid axis walks a flat schedule of nonzero (block_row, block_col)
    entries in row-major order (plus one dummy entry per all-zero block-row so
    bias-only rows still get written). Per entry:
        acc += x_block(col) @ W_block(row, col)^T     (W blocks pre-transposed)
    On the last entry of a block-row: out_block(row) = acc + bias.
    """
    n = pl.program_id(1)

    @pl.when(first_ref[n] == 1)
    def _():
        acc_ref[...] = jnp.zeros_like(acc_ref)

    @pl.when(valid_ref[n] == 1)
    def _():
        # Weight blocks are pre-transposed on the host -> plain x @ w, no in-kernel .T
        acc_ref[...] += jnp.dot(x_ref[...], w_ref[0],
                                preferred_element_type=jnp.float32)

    @pl.when(last_ref[n] == 1)
    def _():
        o_ref[...] = (acc_ref[...] + b_ref[...]).astype(o_ref.dtype)


def _build_schedule(layout):
    """Flat per-nnz schedule tables (1-D int32, row-major over the block layout)."""
    layout = np.asarray(layout)
    R, _ = layout.shape
    row_id, col_id, blk_ptr, is_first, is_last, valid = [], [], [], [], [], []
    ptr = 0
    for r in range(R):
        cs = np.nonzero(layout[r])[0]
        if cs.size == 0:
            # Dummy entry: no compute, still emits bias for this output block-row.
            row_id.append(r); col_id.append(0); blk_ptr.append(0)
            is_first.append(1); is_last.append(1); valid.append(0)
        else:
            for k, c in enumerate(cs):
                row_id.append(r); col_id.append(int(c)); blk_ptr.append(ptr)
                is_first.append(1 if k == 0 else 0)
                is_last.append(1 if k == cs.size - 1 else 0)
                valid.append(1)
                ptr += 1
    to = lambda a: jnp.asarray(np.asarray(a, np.int32))
    return (to(row_id), to(col_id), to(blk_ptr),
            to(is_first), to(is_last), to(valid))


def block_sparse_linear(x, weight_blocks, bias, layout, in_features, out_features,
                        block_size=BLOCK, tm=None, compute_dtype=jnp.bfloat16):
    """x: (..., in_features) -> (..., out_features)."""
    layout = np.asarray(layout)
    R, C = layout.shape
    in_ext = C * block_size
    out_ext = R * block_size

    row_id, col_id, blk_ptr, is_first, is_last, valid = _build_schedule(layout)
    n_entries = int(row_id.shape[0])

    # ---- glue: flatten batch dims, pad features / rows, cast to compute dtype ----
    batch_shape = x.shape[:-1]
    out_dtype = x.dtype
    x2 = x.reshape(-1, x.shape[-1])
    seq = x2.shape[0]
    if tm is None:
        tm = min(TM_DEFAULT, _round_up(max(seq, 1), 8))
    seq_pad = _round_up(seq, tm)
    x2 = jnp.pad(x2, ((0, seq_pad - seq), (0, in_ext - x2.shape[-1])))
    x2 = x2.astype(compute_dtype)

    # Pre-transpose weight blocks (one cheap XLA transpose per call; a persistent
    # module would store them pre-transposed) and cast to the MXU-friendly dtype.
    if weight_blocks.shape[0] == 0:
        w_t = jnp.zeros((1, block_size, block_size), compute_dtype)
    else:
        w_t = jnp.swapaxes(weight_blocks, -1, -2).astype(compute_dtype)

    bias_pad = jnp.zeros((1, out_ext), jnp.float32).at[0, :out_features].set(
        bias.astype(jnp.float32))

    grid = (seq_pad // tm, n_entries)

    out = pl.pallas_call(
        _bsl_kernel,
        out_shape=jax.ShapeDtypeStruct((seq_pad, out_ext), out_dtype),
        grid_spec=pltpu.PrefetchScalarGridSpec(
            num_scalar_prefetch=6,
            grid=grid,
            in_specs=[
                # x tile: input block column required by this schedule entry
                pl.BlockSpec((tm, block_size),
                             lambda s, n, row, col, ptr, first, last, vld:
                             (s, col[n])),
                # weight: one pre-transposed (block, block) tile of the packed array
                pl.BlockSpec((1, block_size, block_size),
                             lambda s, n, row, col, ptr, first, last, vld:
                             (ptr[n], 0, 0)),
                # bias slice for this entry's output block-row
                pl.BlockSpec((1, block_size),
                             lambda s, n, row, col, ptr, first, last, vld:
                             (0, row[n])),
            ],
            out_specs=pl.BlockSpec((tm, block_size),
                                   lambda s, n, row, col, ptr, first, last, vld:
                                   (s, row[n])),
            scratch_shapes=[pltpu.VMEM((tm, block_size), jnp.float32)],
        ),
        compiler_params=pltpu.CompilerParams(
            dimension_semantics=("parallel", "arbitrary")),
    )(row_id, col_id, blk_ptr, is_first, is_last, valid, x2, w_t, bias_pad)

    out = out[:seq, :out_features]
    return out.reshape(batch_shape + (out_features,))


def init_params(key, in_features, out_features, layout, block_size=BLOCK):
    """Deterministic synthetic init mirroring BlockSparseLinear.reset_parameters."""
    layout = np.asarray(layout)
    R, C = layout.shape
    in_ext = C * block_size
    out_ext = R * block_size
    k1, k2 = jax.random.split(key)
    bound = 1.0 / math.sqrt(in_ext)  # kaiming_uniform(a=sqrt(5)) bound
    dense = jax.random.uniform(k1, (out_ext, in_ext), jnp.float32, -bound, bound)
    # scale rows by sqrt(ncol / n_nonzero_cols), per block-row
    n_nonzero = layout.sum(axis=-1, keepdims=True)
    scaling = np.sqrt(C / np.maximum(n_nonzero, 1)).astype(np.float32)
    scaling = np.repeat(scaling, block_size, axis=0)   # (out_ext, 1)
    dense = dense * jnp.asarray(scaling)
    # sparsify: extract nonzero blocks in row-major layout order
    rows, cols = np.nonzero(layout)
    blocks = jnp.stack([dense[r * block_size:(r + 1) * block_size,
                              c * block_size:(c + 1) * block_size]
                        for r, c in zip(rows, cols)])
    bias = jax.random.uniform(k2, (out_features,), jnp.float32, -bound, bound)
    return blocks, bias, dense


if __name__ == "__main__":
    in_features, out_features = 300, 200
    block_size = BLOCK
    R = int(math.ceil(out_features / block_size))   # 2 output block-rows
    C = int(math.ceil(in_features / block_size))    # 3 input block-cols

    # Deterministic sparsity layout (varied nnz per row; every row nonzero).
    layout = np.zeros((R, C), np.int64)
    for r in range(R):
        layout[r, r % C] = 1
        layout[r, C - 1] = 1
        layout[r, (2 * r + 1) % C] = 1

    key = jax.random.PRNGKey(0)
    kw, kx = jax.random.split(key)
    weight_blocks, bias, dense = init_params(kw, in_features, out_features, layout)

    x = jax.random.normal(kx, (2, 7, in_features), jnp.float32)

    out = block_sparse_linear(x, weight_blocks, bias, layout,
                              in_features, out_features)
    jax.block_until_ready(out)

    # Pure-numpy reference with the same bf16 quantization of x / W (f32 accumulate).
    mask = np.kron(np.asarray(layout, np.float32),
                   np.ones((block_size, block_size), np.float32))
    W = np.asarray(dense) * mask
    x2 = np.asarray(x).reshape(-1, in_features)
    x2p = np.pad(x2, ((0, 0), (0, C * block_size - in_features)))
    xq = np.asarray(jnp.asarray(x2p).astype(jnp.bfloat16).astype(jnp.float32))
    Wq = np.asarray(jnp.asarray(W).astype(jnp.bfloat16).astype(jnp.float32))
    ref = (xq @ Wq.T)[:, :out_features] + np.asarray(bias)
    ref = ref.reshape(2, 7, out_features)

    assert out.shape == (2, 7, out_features)
    assert np.allclose(np.asarray(out), ref, rtol=1e-3, atol=1e-3), "mismatch vs reference"
    print("KERNEL_OK")
</pallas_src>

<mosaic_0001>
module attributes {stable_mosaic.version = 11 : i64} {
  func.func @_bsl_kernel(%arg0: i32, %arg1: i32, %arg2: memref<6xi32, #tpu.memory_space<smem>>, %arg3: memref<6xi32, #tpu.memory_space<smem>>, %arg4: memref<6xi32, #tpu.memory_space<smem>>, %arg5: memref<6xi32, #tpu.memory_space<smem>>, %arg6: memref<6xi32, #tpu.memory_space<smem>>, %arg7: memref<6xi32, #tpu.memory_space<smem>>, %arg8: memref<16x128xbf16, #tpu.memory_space<vmem>>, %arg9: memref<1x128x128xbf16, #tpu.memory_space<vmem>>, %arg10: memref<1x128xf32, #tpu.memory_space<vmem>>, %arg11: memref<16x128xf32, #tpu.memory_space<vmem>>, %arg12: memref<16x128xf32, #tpu.memory_space<vmem>>) attributes {dimension_semantics = [#tpu.dimension_semantics<parallel>, #tpu.dimension_semantics<arbitrary>], iteration_bounds = array<i64: 1, 6>, scalar_prefetch = 6 : i64, scratch_operands = 1 : i64, tpu.core_type = #tpu.core_type<tc>, window_params = [{transform_indices = @transform_0, window_bounds = array<i64: 16, 128>}, {transform_indices = @transform_1, window_bounds = array<i64: 1, 128, 128>}, {transform_indices = @transform_2, window_bounds = array<i64: 1, 128>}, {transform_indices = @transform_3, window_bounds = array<i64: 16, 128>}]} {
    %0 = arith.index_cast %arg1 : i32 to index
    %1 = memref.load %arg5[%0] : memref<6xi32, #tpu.memory_space<smem>>
    %c1_i32 = arith.constant 1 : i32
    %2 = arith.cmpi eq, %1, %c1_i32 : i32
    %3 = arith.extui %2 : i1 to i32
    %c0_i32 = arith.constant 0 : i32
    %4 = arith.cmpi ne, %3, %c0_i32 : i32
    scf.if %4 {
      %cst = arith.constant 0.000000e+00 : f32
      %15 = vector.broadcast %cst : f32 to vector<16x128xf32>
      %c0 = arith.constant 0 : index
      %c0_4 = arith.constant 0 : index
      %16 = vector.load %arg12[%c0, %c0_4] : memref<16x128xf32, #tpu.memory_space<vmem>>, vector<16x128xf32>
      tpu.vector_store %arg12[%c0, %c0_4], %15 {strides = array<i32>} : memref<16x128xf32, #tpu.memory_space<vmem>>, vector<16x128xf32>,
    } else {
    }
    %5 = arith.index_cast %arg1 : i32 to index
    %6 = memref.load %arg7[%5] : memref<6xi32, #tpu.memory_space<smem>>
    %c1_i32_0 = arith.constant 1 : i32
    %7 = arith.cmpi eq, %6, %c1_i32_0 : i32
    %8 = arith.extui %7 : i1 to i32
    %c0_i32_1 = arith.constant 0 : i32
    %9 = arith.cmpi ne, %8, %c0_i32_1 : i32
    scf.if %9 {
      %c0 = arith.constant 0 : index
      %c0_4 = arith.constant 0 : index
      %15 = vector.load %arg12[%c0, %c0_4] : memref<16x128xf32, #tpu.memory_space<vmem>>, vector<16x128xf32>
      %c0_5 = arith.constant 0 : index
      %c0_6 = arith.constant 0 : index
      %16 = vector.load %arg8[%c0_5, %c0_6] : memref<16x128xbf16, #tpu.memory_space<vmem>>, vector<16x128xbf16>
      %c0_7 = arith.constant 0 : index
      %c0_8 = arith.constant 0 : index
      %c0_9 = arith.constant 0 : index
      %17 = vector.load %arg9[%c0_7, %c0_8, %c0_9] : memref<1x128x128xbf16, #tpu.memory_space<vmem>>, vector<1x128x128xbf16>
      %18 = vector.shape_cast %17 : vector<1x128x128xbf16> to vector<128x128xbf16>
      %cst = arith.constant dense<0.000000e+00> : vector<16x128xf32>
      %19 = tpu.matmul %16, %18, %cst {dimension_numbers = #tpu.dot_dimension_numbers<[1], [0], [0], [1], [0, 0, 1, 1], [], []>} : vector<16x128xbf16>, vector<128x128xbf16>, vector<16x128xf32> -> vector<16x128xf32>
      %20 = arith.addf %15, %19 : vector<16x128xf32>
      %c0_10 = arith.constant 0 : index
      %c0_11 = arith.constant 0 : index
      %21 = vector.load %arg12[%c0_10, %c0_11] : memref<16x128xf32, #tpu.memory_space<vmem>>, vector<16x128xf32>
      tpu.vector_store %arg12[%c0_10, %c0_11], %20 {strides = array<i32>} : memref<16x128xf32, #tpu.memory_space<vmem>>, vector<16x128xf32>,
    } else {
    }
    %10 = arith.index_cast %arg1 : i32 to index
    %11 = memref.load %arg6[%10] : memref<6xi32, #tpu.memory_space<smem>>
    %c1_i32_2 = arith.constant 1 : i32
    %12 = arith.cmpi eq, %11, %c1_i32_2 : i32
    %13 = arith.extui %12 : i1 to i32
    %c0_i32_3 = arith.constant 0 : i32
    %14 = arith.cmpi ne, %13, %c0_i32_3 : i32
    scf.if %14 {
      %c0 = arith.constant 0 : index
      %c0_4 = arith.constant 0 : index
      %15 = vector.load %arg12[%c0, %c0_4] : memref<16x128xf32, #tpu.memory_space<vmem>>, vector<16x128xf32>
      %c0_5 = arith.constant 0 : index
      %c0_6 = arith.constant 0 : index
      %16 = vector.load %arg10[%c0_5, %c0_6] : memref<1x128xf32, #tpu.memory_space<vmem>>, vector<1x128xf32>
      %17 = vector.broadcast %16 : vector<1x128xf32> to vector<16x128xf32>
      %18 = arith.addf %15, %17 : vector<16x128xf32>
      %c0_7 = arith.constant 0 : index
      %c0_8 = arith.constant 0 : index
      %19 = vector.load %arg11[%c0_7, %c0_8] : memref<16x128xf32, #tpu.memory_space<vmem>>, vector<16x128xf32>
      tpu.vector_store %arg11[%c0_7, %c0_8], %18 {strides = array<i32>} : memref<16x128xf32, #tpu.memory_space<vmem>>, vector<16x128xf32>,
    } else {
    }
    return
  }
  func.func @transform_0(%arg0: i32, %arg1: i32, %arg2: memref<6xi32, #tpu.memory_space<smem>>, %arg3: memref<6xi32, #tpu.memory_space<smem>>, %arg4: memref<6xi32, #tpu.memory_space<smem>>, %arg5: memref<6xi32, #tpu.memory_space<smem>>, %arg6: memref<6xi32, #tpu.memory_space<smem>>, %arg7: memref<6xi32, #tpu.memory_space<smem>>) -> (i32, i32) {
    %0 = arith.index_cast %arg1 : i32 to index
    %1 = memref.load %arg3[%0] : memref<6xi32, #tpu.memory_space<smem>>
    %c0_i32 = arith.constant 0 : i32
    return %arg0, %1 : i32, i32
  }
  func.func @transform_1(%arg0: i32, %arg1: i32, %arg2: memref<6xi32, #tpu.memory_space<smem>>, %arg3: memref<6xi32, #tpu.memory_space<smem>>, %arg4: memref<6xi32, #tpu.memory_space<smem>>, %arg5: memref<6xi32, #tpu.memory_space<smem>>, %arg6: memref<6xi32, #tpu.memory_space<smem>>, %arg7: memref<6xi32, #tpu.memory_space<smem>>) -> (i32, i32, i32) {
    %0 = arith.index_cast %arg1 : i32 to index
    %1 = memref.load %arg4[%0] : memref<6xi32, #tpu.memory_space<smem>>
    %c0_i32 = arith.constant 0 : i32
    %c0_i32_0 = arith.constant 0 : i32
    %c0_i32_1 = arith.constant 0 : i32
    return %1, %c0_i32, %c0_i32_0 : i32, i32, i32
  }
  func.func @transform_2(%arg0: i32, %arg1: i32, %arg2: memref<6xi32, #tpu.memory_space<smem>>, %arg3: memref<6xi32, #tpu.memory_space<smem>>, %arg4: memref<6xi32, #tpu.memory_space<smem>>, %arg5: memref<6xi32, #tpu.memory_space<smem>>, %arg6: memref<6xi32, #tpu.memory_space<smem>>, %arg7: memref<6xi32, #tpu.memory_space<smem>>) -> (i32, i32) {
    %0 = arith.index_cast %arg1 : i32 to index
    %1 = memref.load %arg2[%0] : memref<6xi32, #tpu.memory_space<smem>>
    %c0_i32 = arith.constant 0 : i32
    %c0_i32_0 = arith.constant 0 : i32
    return %c0_i32, %1 : i32, i32
  }
  func.func @transform_3(%arg0: i32, %arg1: i32, %arg2: memref<6xi32, #tpu.memory_space<smem>>, %arg3: memref<6xi32, #tpu.memory_space<smem>>, %arg4: memref<6xi32, #tpu.memory_space<smem>>, %arg5: memref<6xi32, #tpu.memory_space<smem>>, %arg6: memref<6xi32, #tpu.memory_space<smem>>, %arg7: memref<6xi32, #tpu.memory_space<smem>>) -> (i32, i32) {
    %0 = arith.index_cast %arg1 : i32 to index
    %1 = memref.load %arg2[%0] : memref<6xi32, #tpu.memory_space<smem>>
    %c0_i32 = arith.constant 0 : i32
    return %arg0, %1 : i32, i32
  }
}

</mosaic_0001>

<bundles_post_ra>
// kernel: tpu_custom_call.1
= control target key start
LH: loop header
LB: loop body
LE: loop exit
PB: predicated region body
PF: predicated region fallthrough
CT: control target
= control target key end

     0   :  { %s1058_s30 = smov [#allocation4]   ;;  %s1508_s0 = inlined_call_operand.hbm [shape: s32[6], index: 0, kind: input, shape index: {}]   ;;  %s1509_s6 = inlined_call_operand.hbm [shape: bf16[16,384], index: 6, kind: input, shape index: {}]   ;;  %s1510_s7 = inlined_call_operand.hbm [shape: bf16[6,128,128], index: 7, kind: input, shape index: {}]   ;;  %s1511_s8 = inlined_call_operand.vmem [shape: f32[1,256], index: 8, kind: input, shape index: {}]   ;;  %s1512_s9 = inlined_call_operand.hbm [shape: f32[16,256], index: 9, kind: output, shape index: {}]   ;;  %s1513_s1 = inlined_call_operand.vmem [shape: s32[6], index: 1, kind: input, shape index: {}]   ;;  %s1514_s3 = inlined_call_operand.vmem [shape: s32[6], index: 3, kind: input, shape index: {}]   ;;  %s1515_s2 = inlined_call_operand.hbm [shape: s32[6], index: 2, kind: input, shape index: {}]   ;;  %s1516_s4 = inlined_call_operand.vmem [shape: s32[6], index: 4, kind: input, shape index: {}]   ;;  %s1517_s5 = inlined_call_operand.vmem [shape: s32[6], index: 5, kind: input, shape index: {}]  }
   0x1   :  { %1528 = sst [smem:[#allocation28_spill]] %s1509_s6  ;;  %s16_s14 = sshll.u32 %s1513_s1, 4  ;;  %s17_s14 = int_to_ptr.vmem [resolvable:$true] %s16_s14 }
   0x2   :  { %1529 = sst [smem:[#allocation29_spill]] %s1511_s8  ;;  %s22_s17 = sshll.u32 %s1514_s3, 4  ;;  %s23_s17 = int_to_ptr.vmem [resolvable:$true] %s22_s17 }
   0x3   :  { %1530 = sst [smem:[#allocation30_spill]] %s1512_s9  ;;  %s810_s18 = scalar_lea.vmem %s17_s14, 16 }
   0x4   :  { %15 = dma.hbm_to_smem %s1508_s0, 16, %s1058_s30, [#allocation3] }
   0x5   :  { %p811_p0 = scmp.ne.s32.totalorder %s17_s14, %s810_s18  ;;  %p815_p1 = scmp.lt.s32.totalorder %s17_s14, %s17_s14 }
   0x6   :  { %p816_p2 = scmp.lt.s32.totalorder %s810_s18, %s810_s18 }
   0x8   :  { %p817_p3 = por %p816_p2, %p815_p1 }
   0xa   :  { %p818_p4 = pnand %p817_p3, %p811_p0 }
   0xc   :  { %821 = shalt.err (!%p818_p4)  }
   0xd   :  { %s1059_s19 = smov [#allocation5]   ;;  %s1060_s20 = smov [#allocation6]  }
   0xe   :  { %19 = dma.vmem_to_smem %s17_s14, 16, %s1059_s19, [#allocation3] }
   0xf   :  { %21 = dma.hbm_to_smem %s1515_s2, 16, %s1060_s20, [#allocation3] }
  0x10   :  { %s830_s1 = scalar_lea.vmem %s23_s17, 16  ;;  %p835_p6 = scmp.lt.s32.totalorder %s23_s17, %s23_s17 }
  0x11   :  { %p831_p5 = scmp.ne.s32.totalorder %s23_s17, %s830_s1  ;;  %p836_p7 = scmp.lt.s32.totalorder %s830_s1, %s830_s1 }
  0x13   :  { %p837_p8 = por %p836_p7, %p835_p6 }
  0x15   :  { %p838_p9 = pnand %p837_p8, %p831_p5 }
  0x17   :  { %841 = shalt.err (!%p838_p9)  }
  0x18   :  { %s1061_s3 = smov [#allocation7]   ;;  %s26_s24 = sshll.u32 %s1516_s4, 4  ;;  %s27_s24 = int_to_ptr.vmem [resolvable:$true] %s26_s24 }
  0x19   :  { %25 = dma.vmem_to_smem %s23_s17, 16, %s1061_s3, [#allocation3] }
  0x1a   :  { %s30_s27 = sshll.u32 %s1517_s5, 4  ;;  %s842_s2 = scalar_lea.vmem %s27_s24, 16  ;;  %s31_s27 = int_to_ptr.vmem [resolvable:$true] %s30_s27 }
  0x1b   :  { %p843_p10 = scmp.ne.s32.totalorder %s27_s24, %s842_s2  ;;  %p847_p11 = scmp.lt.s32.totalorder %s27_s24, %s27_s24 }
  0x1c   :  { %p848_p12 = scmp.lt.s32.totalorder %s842_s2, %s842_s2 }
  0x1e   :  { %p849_p13 = por %p848_p12, %p847_p11 }
  0x20   :  { %p850_p0 = pnand %p849_p13, %p843_p10 }
  0x22   :  { %853 = shalt.err (!%p850_p0)  }
  0x23   :  { %s1062_s28 = smov [#allocation8]   ;;  %s854_s29 = scalar_lea.vmem %s31_s27, 16 }
  0x24   :  { %29 = dma.vmem_to_smem %s27_s24, 16, %s1062_s28, [#allocation3] }
  0x25   :  { %p855_p1 = scmp.ne.s32.totalorder %s31_s27, %s854_s29  ;;  %p859_p2 = scmp.lt.s32.totalorder %s31_s27, %s31_s27 }
  0x26   :  { %p860_p3 = scmp.lt.s32.totalorder %s854_s29, %s854_s29 }
  0x28   :  { %p861_p4 = por %p860_p3, %p859_p2 }
  0x2a   :  { %p862_p5 = pnand %p861_p4, %p855_p1 }
  0x2c   :  { %865 = shalt.err (!%p862_p5)  }
  0x2d   :  { %s1063_s4 = smov [#allocation9]  }
  0x2e   :  { %33 = dma.vmem_to_smem %s31_s27, 16, %s1063_s4, [#allocation3] }
  0x2f   :  { %996 = dma.done.wait [#allocation3], 96 }
  0x30   :  { %997 = vsyncadd [#allocation3], 4294967200 }
  0x31   :  { %35 = sfence }
  0x32   :  { %36 = vsyncpa [#allocation11], 0 }
  0x33   :  { %38 = vsyncpa [#allocation11 + $0x1], 0 }
  0x34   :  { %39 = vsyncpa [#allocation14], 0 }
  0x35   :  { %41 = vsyncpa [#allocation14 + $0x1], 0 }
  0x36   :  { %42 = vsyncpa [#allocation12], 0 }
  0x37   :  { %44 = vsyncpa [#allocation12 + $0x1], 0  ;;  %s1144_s5 = smov 0   ;;  %s1146_s30 = smov 0  }
  0x38   :  { %s1148_s10 = smov 0   ;;  %s1150_s11 = smov 0  }
  0x39   :  { %s1152_s12 = smov 0   ;;  %s1154_s13 = smov 0  }
  0x3a   :  { %s1156_s14 = smov 0   ;;  %s1158_s15 = smov 0  }
  0x3b   :  { %s1160_s16 = smov 0   ;;  %s1162_s17 = smov 0  }
  0x3c   :  { %s1164_s18 = smov 0   ;;  %s1166_s19 = smov 0  }
  0x3d LB: > { %1531 = sst [smem:[#allocation25_spill]] %s1048_s17  ;;  %s59_s20 = sadd.s32 1, %s1052_s18  ;;  %s1056_s19 = sphi %s1166_s19, %s50_s19   ;;  %s1052_s18 = sphi %s1164_s18, %s1575_s18   ;;  %s1048_s17 = sphi %s1162_s17, %s1574_s17   ;;  %s1044_s16 = sphi %s1160_s16, %s1573_s16   ;;  %s1040_s15 = sphi %s1158_s15, %s1572_s15   ;;  %s1036_s14 = sphi %s1156_s14, %s1571_s14   ;;  %s1032_s13 = sphi %s1154_s13, %s1570_s13   ;;  %s1028_s12 = sphi %s1152_s12, %s1569_s12   ;;  %s1024_s11 = sphi %s1150_s11, %s1568_s11   ;;  %s1020_s10 = sphi %s1148_s10, %s1567_s10   ;;  %s1016_s30 = sphi %s1146_s30, %s1566_s30   ;;  %s1012_s5 = sphi %s1144_s5, %s1565_s5  }
  0x3e   : > { %s66_s0 = sld [smem:[#allocation5 + %s1052_s18]]  ;;  %p60_p6 = scmp.ge.s32.totalorder %s59_s20, 6 }
  0x3f   : > { %s73_s21 = sadd.s32 1, %s1044_s16  ;;  %p80_p7 = scmp.ne.s32.totalorder %s1044_s16, %s1040_s15 }
  0x40   : > { %p1521_p8 = scmp.eq.s32.totalorder %s1056_s19, 0  ;;  %s1577_s20 = smov (%p60_p6, %s59_s20), 0 }
  0x41   : > { %1532 = sst [smem:[#allocation26_spill]] %s1577_s20  ;;  %p1520_p11 = scmp.lt.s32.totalorder %s1056_s19, 6 }
  0x42   : > { %p1214_p9 = por %p1521_p8, %p80_p7  ;;  %s67_s3 = sld [smem:[#allocation5 + %s1577_s20]] }
  0x43   : > { %s1222_s22 = sld [smem:[#allocation4 + %s1052_s18]]  ;;  %s196_s24 = sand.u32 1, %s1044_s16  }
  0x44   : > { %s1226_s23 = sld [smem:[#allocation4 + %s1577_s20]]  ;;  %s597_s25 = sshll.u32 %s196_s24, 3 }
  0x45   : > { %p1233_p12 = pnand %p1520_p11, %p1214_p9  ;;  %s200_s28 = scalar_lea.vmem [#allocation10], %s597_s25 }
  0x46   : > { %s653_s27 = scalar_select %p1214_p9, [#allocation5], [#allocation16] }
  0x47   : > { %s210_s29 = sshll.u32 %s200_s28, 4  ;;  %p602_p0 = scmp.ge.s32.totalorder %s1056_s19, 1  ;;  %s1239_s29 = int_to_ptr.vmem [resolvable:$true] %s210_s29 }
  0x48   : > { %s69_s2 = ssub.s32 %s66_s0, %s67_s3  ;;  %s1579_s27 = smov (!%p1520_p11, %s653_s27), [#allocation19] }
  0x49   : > { %p71_p13 = scmp.eq.s32.totalorder %s69_s2, 0  ;;  %p248_p1 = scmp.lt.s32.totalorder %s1056_s19, 7 }
  0x4a   : > { %s654_s4 = scalar_select %p1214_p9, %s1052_s18, 0 }
  0x4b   : > { %s1245_s9 = scalar_select %p71_p13, %s1044_s16, %s73_s21  }
  0x4c   : > { %s1581_s4 = smov (!%p1520_p11, %s654_s4), 0  ;;  %p1253_p2 = pnand %p602_p0, %p248_p1 }
  0x4d   : > { %1535 = sst [smem:[#allocation27_spill]] %s1245_s9  ;;  %s1262_s21 = scalar_lea.sflag [#allocation11], %s196_s24 }
  0x4e   : > { %s201_s8 = sld [smem:[%s1579_s27 + %s1581_s4]]  ;;  %p868_p4 = pneg %p1233_p12 }
  0x4f   : > { %s1536_s17 = scalar_select %p1253_p2, 1, 0 }
  0x50   : > { %s1537_s6 = sld [smem:[#allocation28_spill]] }
  0x54   : > { %s598_s0 = sshll.u32 %s201_s8, 6 }
  0x56   : > { %s1260_s2 = scalar_lea.hbm %s1537_s6, %s598_s0  ;;  %s871_s8 = scalar_lea.hbm %s1537_s6, 384 }
  0x57   : > { %s866_s1 = scalar_lea.hbm %s1260_s2, 128  ;;  %p872_p7 = scmp.lt.s32.totalorder %s1260_s2, %s1537_s6 }
  0x58   : > { %p867_p3 = scmp.ne.s32.totalorder %s1260_s2, %s866_s1  ;;  %p873_p9 = scmp.lt.s32.totalorder %s871_s8, %s866_s1 }
  0x5a   : > { %p869_p5 = pnand %p868_p4, %p867_p3  ;;  %p874_p13 = por %p873_p9, %p872_p7 }
  0x5c   : > { %p870_p6 = pneg %p869_p5 }
  0x5e   : > { %p875_p0 = pnand %p874_p13, %p870_p6 }
  0x60   : > { %878 = shalt.err (!%p875_p0)
}
  0x61   : > { %s879_s24 = scalar_lea.vmem %s1239_s29, 128  ;;  %s1064_s0 = smov [#allocation10]  }
  0x62   : > { %p880_p1 = scmp.ne.s32.totalorder %s1239_s29, %s879_s24  ;;  %s884_s3 = sshll.u32 %s1064_s0, 4  ;;  %s885_s3 = int_to_ptr.vmem [resolvable:$false] %s884_s3 }
  0x63   : > { %s886_s25 = scalar_lea.vmem %s885_s3, 256  ;;  %p887_p5 = scmp.lt.s32.totalorder %s1239_s29, %s885_s3 }
  0x64   : > { %p882_p11 = pnand %p880_p1, %p868_p4  ;;  %p888_p8 = scmp.lt.s32.totalorder %s886_s25, %s879_s24 }
  0x66   : > { %p883_p3 = pneg %p882_p11  ;;  %p889_p10 = por %p888_p8, %p887_p5 }
  0x68   : > { %p890_p2 = pnand %p889_p10, %p883_p3 }
  0x6a   : > { %893 = shalt.err (!%p890_p2)
}
  0x6b   : > { %s1065_s9 = smov 192   ;;  %s1522_s1 = smov 64  }
  0x6c   : > { %s1523_s27 = smov 4   ;;  %s593_s28 = sadd.s32 4294967295, %s1056_s19  }
  0x6d   : > { %670 = dma.hbm_to_vmem [thread:$0]  (!%p1233_p12), %s1260_s2, 128, %s1239_s29, %s1262_s21, %s1065_s9, %s1522_s1, %s1523_s27  }
  0x6e   : > { %s594_s8 = sadd.s32 4294967294, %s1056_s19   ;;  %p87_p8 = scmp.eq.s32.totalorder %s593_s28, 0 }
  0x6f   : > { %s96_s4 = sld [smem:[#allocation6 + %s1052_s18]]  ;;  %s101_s0 = sadd.s32 1, %s1032_s13 }
  0x70   : > { %s97_s24 = sld [smem:[#allocation6 + %s1577_s20]]  ;;  %p1538_p10 = scmp.ne.s32.totalorder %s1040_s15, %s1036_s14 }
  0x71   : > { %p108_p2 = scmp.ne.s32.totalorder %s1032_s13, %s1028_s12  ;;  %p114_p4 = scmp.ne.s32.totalorder %s1028_s12, %s1024_s11 }
  0x72   : > { %p1293_p11 = por %p87_p8, %p1538_p10  ;;  %s155_s26 = ssub.s32 %s1222_s22, %s1226_s23 }
  0x73   : > { %p1540_p12 = scmp.eq.s32.totalorder %s1056_s19, 0  ;;  %p157_p7 = scmp.eq.s32.totalorder %s155_s26, 0 }
  0x74   : > { %s1539_s3 = scalar_select %p1293_p11, 1, 0 }
  0x75   : > { %p1305_p6 = por %p108_p2, %p1540_p12  ;;  %p1309_p9 = por %p114_p4, %p87_p8 }
  0x76   : > { %s159_s2 = sadd.s32 1, %s1020_s10  ;;  %s98_s22 = ssub.s32 %s96_s4, %s97_s24 }
  0x77   : > { %s1542_s14 = scalar_select %p1309_p9, 1, 0 }
  0x78   : > { %s1315_s11 = scalar_select %p157_p7, %s1020_s10, %s159_s2  }
  0x79   : > { %p169_p13 = scmp.ne.s32.totalorder %s1020_s10, %s1016_s30  ;;  %p99_p0 = scmp.eq.s32.totalorder %s98_s22, 0 }
  0x7a   : > { %p170_p1 = scmp.eq.s32.totalorder %s593_s28, 5  ;;  %p175_p3 = scmp.ne.s32.totalorder %s1016_s30, %s1012_s5 }
  0x7b   : > { %p176_p5 = scmp.eq.s32.totalorder %s594_s8, 5  ;;  %s220_s9 = sand.u32 1, %s1032_s13  }
  0x7c   : > { %s1322_s23 = scalar_select %p99_p0, %s1032_s13, %s101_s0  }
  0x7d   : > { %p1324_p10 = por %p170_p1, %p169_p13  ;;  %p1328_p8 = por %p176_p5, %p175_p3 }
  0x7e   : > { %p1545_p2 = scmp.lt.s32.totalorder %s1056_s19, 6  ;;  %s599_s28 = sshll.u32 %s220_s9, 6 }
  0x7f   : > { %s1543_s21 = scalar_select %p1324_p10, 1, 0 }
  0x80   : > { %s1544_s25 = scalar_select %p1328_p8, 1, 0 }
  0x81   : > { %p1337_p4 = pnand %p1545_p2, %p1305_p6  ;;  %p1547_p12 = pmov %p1545_p2 }
  0x82   : > { %s656_s8 = scalar_select %p1305_p6, [#allocation6], [#allocation17] }
  0x83   : > { %s657_s24 = scalar_select %p1305_p6, %s1052_s18, 0 }
  0x84   : > { %s1583_s8 = smov (!%p1547_p12, %s656_s8), [#allocation20]  ;;  %p1548_p7 = pmov %p1545_p2 }
  0x85   : > { %s224_s26 = scalar_lea.vmem [#allocation13], %s599_s28  ;;  %s1357_s29 = scalar_lea.sflag [#allocation14], %s220_s9 }
  0x86   : > { %s1585_s24 = smov (!%p1548_p7, %s657_s24), 0  ;;  %s232_s2 = sshll.u32 %s224_s26, 4  ;;  %s1350_s2 = int_to_ptr.vmem [resolvable:$true] %s232_s2 }
  0x87   : > { %s225_s0 = sld [smem:[%s1583_s8 + %s1585_s24]]  ;;  %p896_p13 = pneg %p1337_p4 }
  0x88   : > { %s899_s24 = scalar_lea.hbm %s1510_s7, 6144 }
  0x8d   : > { %s623_s22 = sshll.u32 %s225_s0, 10 }
  0x8e   : > { %s1355_s6 = scalar_lea.hbm %s1510_s7, %s623_s22 }
  0x8f   : > { %s894_s20 = scalar_lea.hbm %s1355_s6, 1024  ;;  %p900_p3 = scmp.lt.s32.totalorder %s1355_s6, %s1510_s7 }
  0x90   : > { %p895_p6 = scmp.ne.s32.totalorder %s1355_s6, %s894_s20  ;;  %p901_p5 = scmp.lt.s32.totalorder %s899_s24, %s894_s20 }
  0x92   : > { %p897_p0 = pnand %p896_p13, %p895_p6  ;;  %p902_p2 = por %p901_p5, %p900_p3 }
  0x94   : > { %p898_p1 = pneg %p897_p0 }
  0x96   : > { %p903_p12 = pnand %p902_p2, %p898_p1 }
  0x98   : > { %906 = shalt.err (!%p903_p12)
}
  0x99   : > { %s907_s1 = scalar_lea.vmem %s1350_s2, 1024  ;;  %s1068_s27 = smov [#allocation13]  }
  0x9a   : > { %p908_p7 = scmp.ne.s32.totalorder %s1350_s2, %s907_s1  ;;  %s912_s9 = sshll.u32 %s1068_s27, 4  ;;  %s913_s9 = int_to_ptr.vmem [resolvable:$false] %s912_s9 }
  0x9b   : > { %s914_s22 = scalar_lea.vmem %s913_s9, 2048  ;;  %p915_p0 = scmp.lt.s32.totalorder %s1350_s2, %s913_s9 }
  0x9c   : > { %p910_p8 = pnand %p908_p7, %p896_p13  ;;  %p916_p10 = scmp.lt.s32.totalorder %s914_s22, %s907_s1 }
  0x9e   : > { %p911_p6 = pneg %p910_p8  ;;  %p917_p9 = por %p916_p10, %p915_p0 }
  0xa0   : > { %p918_p11 = pnand %p917_p9, %p911_p6 }
  0xa2   : > { %921 = shalt.err (!%p918_p11)
}
  0xa3   : > { %s1549_s20 = smov 4   ;;  %s1550_s28 = smov 64  }
  0xa4   : > { %675 = dma.hbm_to_vmem [thread:$0]  (!%p1337_p4), %s1355_s6, 1024, %s1350_s2, %s1357_s29, %s1550_s28, %s1550_s28, %s1549_s20  }
  0xa5   : > { %p1551_p8 = scmp.ne.s32.totalorder %s1536_s17, 0 }
  0xa6   : > { %s254_s8 = sand.u32 (!%p1551_p8), 1, %s1040_s15   ;;  %p1552_p11 = scmp.ne.s32.totalorder (!%p1551_p8), %s1539_s3, 0 }
  0xa7   : > { %252 = sbr.rel (%p1551_p8) target bundleno = 504 (0x1f8), region = 32  ;;  %s1384_s24 = sshll.u32 (!%p1551_p8), %s254_s8, 3 }
  0xa8   : > { %s255_s0 = scalar_lea.sflag (!%p1551_p8), [#allocation11], %s254_s8  ;;  %s258_s26 = scalar_lea.vmem (!%p1551_p8), [#allocation10], %s1384_s24 }
  0xac   : > { %999 = dma.done.wait (%p1552_p11), %s255_s0, 128  }
  0xad   : > { %1001 = vsyncadd (%p1552_p11), %s255_s0, 4294967168  ;;  %s263_s4 = sand.u32 1, %s1028_s12   ;;  %p1553_p9 = scmp.ne.s32.totalorder %s1542_s14, 0 }
  0xae   : > { %s604_s6 = sshll.u32 %s263_s4, 6  ;;  %s264_s2 = scalar_lea.sflag [#allocation14], %s263_s4 }
  0xaf   : > { %s1392_s17 = scalar_lea.vmem [#allocation13], %s604_s6 }
  0xb0   : > { %1003 = dma.done.wait (%p1553_p9), %s264_s2, 1024  }
  0xb1   : > { %1005 = vsyncadd (%p1553_p9), %s264_s2, 4294966272  ;;  %s1554_s29 = sld [smem:[#allocation25_spill]]  ;;  %s296_s1 = sand.u32 1, %s1016_s30  }
  0xb2   : > { %s605_s3 = sshll.u32 %s296_s1, 4  ;;  %s1555_s28 = sld [smem:[#allocation29_spill]] }
  0xb3   : > { %s1409_s0 = scalar_lea.vmem [#allocation15], %s605_s3 }
  0xb7   : > { %s302_s27 = sld [smem:[#allocation4 + %s1554_s29]] }
  0xb8   : > { %s310_s9 = sld [smem:[#allocation7 + %s1554_s29]] }
  0xbd   : > { %p303_p10 = scmp.lt.s32.totalorder %s302_s27, 1 }
  0xbe   : > { %p606_p4 = scmp.ne.s32.totalorder %s310_s9, 1 }
  0xbf   : > { %s1587_s27 = smov (!%p303_p10, %s302_s27), 1 }
  0xc0   : > { %s305_s8 = scalar_lea.vmem %s1555_s28, %s1587_s27  ;;  %314 = sbr.rel (%p606_p4) target bundleno = 199 (0xc7), region = 44 }
  0xc5   : > { %v1069_v0 = vmov 0.0  }
  0xc6   : > { %315 = vst [vmem:[#allocation2] sm:$0xff] %v1069_v0  ;;  %316 = vst [vmem:[#allocation2 + $0x8] sm:$0xff] %v1069_v0 }
  0xc7 PF: > { %s1556_s14 = sld [smem:[#allocation25_spill]] }
  0xcd   : > { %s317_s4 = sld [smem:[#allocation9 + %s1556_s14]] }
  0xd3   : > { %p607_p13 = scmp.ne.s32.totalorder %s317_s4, 1 }
  0xd5   : > { %321 = sbr.rel (%p607_p13) target bundleno = 451 (0x1c3), region = 48 }
  0xda   : > { %v793_v1 = vld [vmem:[%s1392_s17 + $0x38] sm:$0xff]   ;;  %v1070_v2 = vmov 0.0   ;;  %v794_v3 = vld [vmem:[%s1392_s17 + $0x30] sm:$0xff]   ;;  %vm1071_vm0 = vmmov 0   ;;  %v795_v4 = vld [vmem:[%s1392_s17 + $0x28] sm:$0xff]  }
  0xdb   : > { %633 = vmatprep.subr.bf16.mxu0 %v1070_v2  ;;  %649 = vmatprep.mubr.msk.bf16.mxu0 %vm1071_vm0, %v1070_v2  ;;  %v796_v5 = vld [vmem:[%s1392_s17 + $0x20] sm:$0xff]   ;;  %v797_v6 = vld [vmem:[%s1392_s17 + $0x18] sm:$0xff]   ;;  %v798_v7 = vld [vmem:[%s1392_s17 + $0x10] sm:$0xff]  }
  0xdc   : > { %634 = vmatpush3.bf16.msra.mxu0 %v793_v1  ;;  %v799_v8 = vld [vmem:[%s1392_s17 + $0x8] sm:$0xff]   ;;  %v800_v9 = vld [vmem:[%s1392_s17] sm:$0xff]   ;;  %v801_v10 = vld [vmem:[%s258_s26] sm:$0xff]  }
  0xdd   : > { %635 = vmatprep.subr.bf16.mxu0 %v1070_v2  ;;  %v322_v11 = vld [vmem:[#allocation2] sm:$0xff]  ;;  %v323_v15 = vld [vmem:[#allocation2 + $0x8] sm:$0xff] }
  0xe0   : > { %636 = vmatpush3.bf16.msra.mxu0 %v794_v3 }
  0xe1   : > { %637 = vmatprep.subr.bf16.mxu0 %v1070_v2 }
  0xe4   : > { %638 = vmatpush3.bf16.msra.mxu0 %v795_v4 }
  0xe5   : > { %639 = vmatprep.subr.bf16.mxu0 %v1070_v2 }
  0xe8   : > { %640 = vmatpush3.bf16.msra.mxu0 %v796_v5 }
  0xe9   : > { %641 = vmatprep.subr.bf16.mxu0 %v1070_v2 }
  0xec   : > { %642 = vmatpush3.bf16.msra.mxu0 %v797_v6 }
  0xed   : > { %643 = vmatprep.subr.bf16.mxu0 %v1070_v2 }
  0xf0   : > { %644 = vmatpush3.bf16.msra.mxu0 %v798_v7 }
  0xf1   : > { %645 = vmatprep.subr.bf16.mxu0 %v1070_v2 }
  0xf4   : > { %646 = vmatpush3.bf16.msra.mxu0 %v799_v8 }
  0xf5   : > { %647 = vmatprep.subr.bf16.mxu0 %v1070_v2 }
  0xf8   : > { %648 = vmatpush3.bf16.msra.mxu0 %v800_v9 }
  0xfb   : > { %650 = vmatmul.mubr.bf16.vlgmr.msra.gmra.mxu0 %v801_v10 }
 0x1bb   : > { %v430_v12 = vpop.f32.mrf.mxu0 }
 0x1bc   : > { %v437_v13 = vadd.f32 %v430_v12, %v322_v11 }
 0x1bd   : > { %v651_v14 = vpop.f32.mrf.mxu0 }
 0x1be   : > { %439 = vst [vmem:[#allocation2] sm:$0xff] %v437_v13 }
 0x1bf   : > { %v433_v16 = vpop.f32.mrf.mxu0 }
 0x1c0   : > { %v438_v17 = vadd.f32 %v433_v16, %v323_v15 }
 0x1c1   : > { %v652_v18 = vpop.f32.mrf.mxu0 }
 0x1c2   : > { %440 = vst [vmem:[#allocation2 + $0x8] sm:$0xff] %v438_v17 }
 0x1c3 PF: > { %s1557_s6 = sld [smem:[#allocation25_spill]] }
 0x1c9   : > { %s441_s2 = sld [smem:[#allocation8 + %s1557_s6]] }
 0x1cf   : > { %p617_p1 = scmp.ne.s32.totalorder %s441_s2, 1 }
 0x1d1   : > { %445 = sbr.rel (%p617_p1) target bundleno = 475 (0x1db), region = 52 }
 0x1d6   : > { %v446_v19 = vld [vmem:[#allocation2] sm:$0xff]  ;;  %v447_v21 = vld [vmem:[#allocation2 + $0x8] sm:$0xff] }
 0x1d7   : > { %v618_v20 = vld [vmem:[%s305_s8] ss:$0 sm:$0xff] }
 0x1d8   : > { %v455_v22 = vadd.f32 %v618_v20, %v446_v19  ;;  %v456_v23 = vadd.f32 %v618_v20, %v447_v21 }
 0x1da   : > { %457 = vst [vmem:[%s1409_s0] sm:$0xff] %v455_v22  ;;  %458 = vst [vmem:[%s1409_s0 + $0x8] sm:$0xff] %v456_v23 }
 0x1db PF: > { %p1559_p3 = scmp.ne.s32.totalorder %s1543_s21, 0  ;;  %s1560_s29 = sld [smem:[#allocation25_spill]] }
 0x1dc   : > { %s476_s9 = sshll.u32 %s1409_s0, 4  ;;  %s1561_s8 = sld [smem:[#allocation30_spill]]  ;;  %s1436_s9 = int_to_ptr.vmem [resolvable:$true] %s476_s9 }
 0x1dd   : > { %s661_s3 = scalar_select %p1559_p3, [#allocation4], [#allocation18] }
 0x1de   : > { %s1445_s4 = scalar_lea.sflag [#allocation12], %s296_s1  ;;  %s922_s6 = scalar_lea.vmem %s1436_s9, 256 }
 0x1df   : > { %p923_p5 = scmp.ne.s32.totalorder %s1436_s9, %s922_s6  ;;  %s1072_s0 = smov [#allocation15]  }
 0x1e0   : > { %s926_s2 = sshll.u32 %s1072_s0, 4  ;;  %s927_s2 = int_to_ptr.vmem [resolvable:$false] %s926_s2 }
 0x1e1   : > { %s1589_s29 = smov (!%p1559_p3, %s1560_s29), 0  ;;  %p924_p2 = pnand %p923_p5, %p1559_p3 }
 0x1e2   : > { %s467_s27 = sld [smem:[%s661_s3 + %s1589_s29]]  ;;  %s928_s24 = scalar_lea.vmem %s927_s2, 512 }
 0x1e3   : > { %p925_p12 = pneg %p924_p2  ;;  %p929_p7 = scmp.lt.s32.totalorder %s1436_s9, %s927_s2 }
 0x1e4   : > { %p930_p6 = scmp.lt.s32.totalorder %s928_s24, %s922_s6 }
 0x1e6   : > { %p931_p0 = por %p930_p6, %p929_p7 }
 0x1e8   : > { %s620_s22 = sshll.u32 %s467_s27, 7  ;;  %p932_p8 = pnand %p931_p0, %p925_p12 }
 0x1e9   : > { %s1441_s14 = scalar_lea.hbm %s1561_s8, %s620_s22 }
 0x1ea   : > { %935 = shalt.err (!%p932_p8)
}
 0x1eb   : > { %s936_s1 = scalar_lea.hbm %s1441_s14, 256  ;;  %s940_s29 = scalar_lea.hbm %s1561_s8, 512 }
 0x1ec   : > { %p937_p11 = scmp.ne.s32.totalorder %s1441_s14, %s936_s1  ;;  %p941_p4 = scmp.lt.s32.totalorder %s1441_s14, %s1561_s8 }
 0x1ed   : > { %p942_p13 = scmp.lt.s32.totalorder %s940_s29, %s936_s1 }
 0x1ee   : > { %p938_p9 = pnand %p937_p11, %p1559_p3 }
 0x1ef   : > { %p943_p1 = por %p942_p13, %p941_p4 }
 0x1f0   : > { %p939_p10 = pneg %p938_p9 }
 0x1f2   : > { %p944_p5 = pnand %p943_p1, %p939_p10 }
 0x1f4   : > { %947 = shalt.err (!%p944_p5)
}
 0x1f5   : > { %s1073_s22 = smov 128   ;;  %s1074_s20 = smov 256  }
 0x1f6   : > { %s1075_s28 = smov 8  }
 0x1f7   : > { %663 = dma.vmem_to_hbm [thread:$0]  (%p1559_p3), %s1436_s9, 256, %s1441_s14, %s1445_s4, %s1073_s22, %s1074_s20, %s1075_s28  }
 0x1f8 PF: > { %p681_p2 = scmp.ge.s32.totalorder %s1056_s19, 2  ;;  %s491_s6 = sand.u32 1, %s1012_s5  }
 0x1f9   : > { %p1562_p12 = scmp.ne.s32.totalorder %s1544_s25, 0  ;;  %s492_s0 = scalar_lea.sflag [#allocation12], %s491_s6 }
 0x1fb   : > { %p677_p7 = pnand %p681_p2, %p1562_p12 }
 0x1fd   : > { %p678_p6 = pneg %p677_p7 }
 0x1ff   : > { %1007 = dma.done.wait (%p678_p6), %s492_s0, 256  }
 0x200   : > { %1009 = vsyncadd (%p678_p6), %s492_s0, 4294967040  ;;  %s50_s19 = sadd.s32 1, %s1056_s19   ;;  %s1563_s21 = sld [smem:[#allocation27_spill]] }
 0x201   : > { %p47_p0 = scmp.ge.s32.totalorder %s50_s19, 8   ;;  %s1564_s9 = sld [smem:[#allocation26_spill]] }
 0x202   : > { %s1565_s5 = smov %s1016_s30  ;;  %s1566_s30 = smov %s1020_s10 }
 0x203   : > { %s1567_s10 = smov %s1315_s11  ;;  %s1568_s11 = smov %s1028_s12 }
 0x204   : > { %s1569_s12 = smov %s1032_s13  ;;  %s1570_s13 = smov %s1322_s23 }
 0x205   : > { %s1571_s14 = smov %s1040_s15  ;;  %s1572_s15 = smov %s1044_s16 }
 0x206   : > { %s1573_s16 = smov %s1563_s21  ;;  %s1574_s17 = smov %s1052_s18 }
 0x207   : > { %s1575_s18 = smov %s1564_s9  ;;  %49 = sbr.rel (!%p47_p0) target bundleno = 61 (0x3d), region = 105 }
 0x20c   :  { %497 = vsyncpa [#allocation11], 1 }
 0x20d   :  { %499 = vsyncpa [#allocation11 + $0x1], 1 }
 0x20e   :  { %500 = vsyncpa [#allocation14], 1 }
 0x20f   :  { %502 = vsyncpa [#allocation14 + $0x1], 1 }
 0x210   :  { %503 = vsyncpa [#allocation12], 1 }
 0x211   :  { %505 = vsyncpa [#allocation12 + $0x1], 1 }

</bundles_post_ra>
